<compile_context>
chip_gen: v7x
topology: tpu7x:2x2x1
jax: 0.10.0
libtpu: 0.0.40
codegen_flags: <defaults>
</compile_context>

<pallas_src>
import functools

import jax
import jax.numpy as jnp
from jax.experimental import pallas as pl
from jax.experimental.pallas import tpu as pltpu


def _round_up(x, m):
    return (x + m - 1) // m * m


def _vmem_budget():
    """Return (per-input-buffer budget, vmem_limit_bytes) for this TPU gen."""
    budget, limit = 8 * 1024 * 1024, 48 * 1024 * 1024
    try:
        info = pltpu.get_tpu_info()
        phys = getattr(info, "vmem_capacity_bytes", None)
        if phys is not None and phys <= 80 * 1024 * 1024:
            # v7x-class: only 64 MiB physical VMEM per TC -> smaller buffers,
            # and cap the scoped limit well below physical.
            budget, limit = 6 * 1024 * 1024, 40 * 1024 * 1024
    except Exception:
        pass  # conservative defaults above are safe on all generations
    return budget, limit


def _choose_tiles(r, hw, itemsize, budget_bytes, split_min_elems):
    """Pick (r_tile, hw_block, mask_tail) for a (R, HW) row-mean reduction."""
    sub = 16 if itemsize == 2 else (32 if itemsize == 1 else 8)
    r_min = r if r <= sub else sub

    if r_min * hw * itemsize <= budget_bytes:
        # Preferred path: full, contiguous HW rows; split the row axis only.
        hw_block = hw
        mask_tail = False
        if r <= sub:
            r_tile = r
        else:
            max_rows = budget_bytes // (hw * itemsize)
            r_tile = min(_round_up(r, sub), max(sub, (max_rows // sub) * sub))
            if r_tile >= r:
                r_tile = r
    else:
        # HW too large even for the minimum row tile: chunk HW (128-aligned)
        # and reduce over the innermost grid axis.
        r_tile = r_min
        max_chunk = (budget_bytes // (r_tile * itemsize)) // 128 * 128
        hw_block = max(128, min(_round_up(hw, 128), max_chunk))
        mask_tail = (hw % hw_block) != 0

    # Megacore: ensure the leading ("parallel") row axis has >= 2 blocks when
    # the total work is non-trivial so both v7x TensorCores are used.
    if r > r_min and r * hw >= split_min_elems and pl.cdiv(r, r_tile) < 2:
        half = _round_up(pl.cdiv(r, 2), sub)
        if half < r:
            r_tile = max(r_min, min(half, r_tile))

    return r_tile, hw_block, mask_tail


def _gap_kernel(x_ref, o_ref, acc_ref, *, inv_hw, hw_true, hw_block, mask_tail):
    k = pl.program_id(1)
    last = pl.num_programs(1) - 1

    @pl.when(k == 0)
    def _init():
        acc_ref[...] = jnp.zeros_like(acc_ref)

    def _accumulate(mask):
        x = x_ref[...]  # (r_tile, hw_block), kept in its native dtype
        if mask:
            # Zero the OOB tail of the spatial axis (select, not multiply, so
            # NaN/Inf garbage in the padded region cannot propagate).
            start = k * hw_block
            idx = jax.lax.broadcasted_iota(jnp.int32, x.shape, dimension=1)
            x = jnp.where(start + idx < hw_true, x, jnp.zeros((), x.dtype))
        acc_ref[...] += jnp.sum(x, axis=-1, keepdims=True, dtype=jnp.float32)

    if mask_tail:
        # Only the last HW chunk overruns the true spatial extent; keep all
        # other steps on the unmasked fast path.
        @pl.when(k < last)
        def _body():
            _accumulate(mask=False)

        @pl.when(k == last)
        def _body_tail():
            _accumulate(mask=True)
    else:
        _accumulate(mask=False)

    @pl.when(k == last)
    def _finalize():
        o_ref[...] = (acc_ref[...] * jnp.float32(inv_hw)).astype(o_ref.dtype)


def _gap_single(x, *, jnp_fallback_elems=1 << 20, budget_bytes=None):
    """Global average pool one NCHW tensor -> (N, C)."""
    assert x.ndim == 4, f"expected NCHW input, got shape {x.shape}"
    n, c, h, w = x.shape
    hw = h * w
    r = n * c

    # Tiny pyramid levels: a fused jnp.mean beats a kernel launch.
    if r * hw <= jnp_fallback_elems:
        return jnp.mean(x, axis=(2, 3))

    x_flat = x.reshape(r, hw)  # contiguous (R, HW) slab in HBM
    itemsize = jnp.dtype(x.dtype).itemsize
    default_budget, vmem_limit = _vmem_budget()
    budget = default_budget if budget_bytes is None else budget_bytes
    r_tile, hw_block, mask_tail = _choose_tiles(
        r, hw, itemsize, budget, split_min_elems=1 << 20)
    num_r = pl.cdiv(r, r_tile)
    num_hw = pl.cdiv(hw, hw_block)

    kernel = functools.partial(
        _gap_kernel,
        inv_hw=1.0 / float(hw),
        hw_true=hw,
        hw_block=hw_block,
        mask_tail=mask_tail,
    )

    out = pl.pallas_call(
        kernel,
        out_shape=jax.ShapeDtypeStruct((r, 1), x.dtype),
        grid_spec=pltpu.PrefetchScalarGridSpec(
            num_scalar_prefetch=0,
            grid=(num_r, num_hw),  # reduction (HW) axis innermost
            in_specs=[pl.BlockSpec((r_tile, hw_block), lambda ri, k: (ri, k))],
            out_specs=pl.BlockSpec((r_tile, 1), lambda ri, k: (ri, 0)),
            scratch_shapes=[pltpu.VMEM((r_tile, 1), jnp.float32)],
        ),
        compiler_params=pltpu.CompilerParams(
            dimension_semantics=("parallel", "arbitrary"),
            vmem_limit_bytes=vmem_limit,
        ),
        cost_estimate=pl.CostEstimate(
            flops=r * hw,
            bytes_accessed=r * hw * itemsize + r * itemsize,
            transcendentals=0,
        ),
    )(x_flat)
    return out.reshape(n, c)


def global_average_pooling(inputs, *, jnp_fallback_elems=1 << 20,
                           budget_bytes=None):
    """Forward pass of the GlobalAveragePooling neck.

    Accepts a single NCHW array, or a tuple/list of NCHW arrays.
    Returns (N, C) per input (container type preserved).
    """
    kw = dict(jnp_fallback_elems=jnp_fallback_elems, budget_bytes=budget_bytes)
    if isinstance(inputs, tuple):
        return tuple(_gap_single(x, **kw) for x in inputs)
    elif isinstance(inputs, list):
        return [_gap_single(x, **kw) for x in inputs]
    elif isinstance(inputs, jnp.ndarray) or hasattr(inputs, "shape"):
        return _gap_single(inputs, **kw)
    else:
        raise TypeError("neck inputs should be tuple, list or jax array")


if __name__ == "__main__":
    key = jax.random.PRNGKey(0)
    k0, k1, k2 = jax.random.split(key, 3)

    # Small NCHW input consistent with the module: batch=2, channels=4, 16x16.
    x = jax.random.normal(k0, (2, 4, 16, 16), dtype=jnp.float32)
    ref = jnp.mean(x, axis=(2, 3))

    # Force the Pallas path (fallback would otherwise absorb these tiny shapes).
    out = jax.block_until_ready(global_average_pooling(x, jnp_fallback_elems=0))
    assert out.shape == (2, 4), out.shape
    assert jnp.allclose(out, ref, atol=1e-5, rtol=1e-4)

    # Tuple path (multi-scale inputs); the (2,8,8,8) level has HW=64 (< 128),
    # handled as a full-lane-dim block.
    x2 = jax.random.normal(k1, (2, 8, 8, 8), dtype=jnp.float32)
    outs = jax.block_until_ready(
        global_average_pooling((x, x2), jnp_fallback_elems=0))
    assert outs[0].shape == (2, 4) and outs[1].shape == (2, 8)
    assert jnp.allclose(outs[0], ref, atol=1e-5, rtol=1e-4)
    assert jnp.allclose(outs[1], jnp.mean(x2, axis=(2, 3)), atol=1e-5, rtol=1e-4)

    # bf16 path: data stays bf16 in VMEM, accumulation in f32 scratch.
    x_bf16 = x.astype(jnp.bfloat16)
    out_bf16 = jax.block_until_ready(
        global_average_pooling(x_bf16, jnp_fallback_elems=0))
    ref_bf16 = jnp.mean(x_bf16.astype(jnp.float32), axis=(2, 3))
    assert out_bf16.dtype == jnp.bfloat16
    assert jnp.allclose(out_bf16.astype(jnp.float32), ref_bf16,
                        atol=2e-2, rtol=2e-2)

    # Chunked-HW + masked-tail path, exercised via a tiny artificial VMEM
    # budget (HW=528 -> 128-wide chunks, last chunk masked).
    x3 = jax.random.normal(k2, (1, 8, 16, 33), dtype=jnp.float32)
    out3 = jax.block_until_ready(
        global_average_pooling(x3, jnp_fallback_elems=0, budget_bytes=1024))
    assert out3.shape == (1, 8)
    assert jnp.allclose(out3, jnp.mean(x3, axis=(2, 3)), atol=1e-5, rtol=1e-4)

    # Default path (fallback enabled for tiny levels) still matches.
    out_default = jax.block_until_ready(global_average_pooling(x))
    assert jnp.allclose(out_default, ref, atol=1e-5, rtol=1e-4)

    print("KERNEL_OK")
</pallas_src>

<mosaic_0001>
module attributes {stable_mosaic.version = 11 : i64} {
  func.func @_gap_kernel(%arg0: i32, %arg1: i32, %arg2: memref<8x256xf32, #tpu.memory_space<vmem>>, %arg3: memref<8x1xf32, #tpu.memory_space<vmem>>, %arg4: memref<8x1xf32, #tpu.memory_space<vmem>>) attributes {dimension_semantics = [#tpu.dimension_semantics<parallel>, #tpu.dimension_semantics<arbitrary>], iteration_bounds = array<i64: 1, 1>, scalar_prefetch = 0 : i64, scratch_operands = 1 : i64, tpu.core_type = #tpu.core_type<tc>, window_params = [{transform_indices = @transform_0, window_bounds = array<i64: 8, 256>}, {transform_indices = @transform_1, window_bounds = array<i64: 8, 1>}]} {
    %c0_i32 = arith.constant 0 : i32
    %0 = arith.cmpi eq, %arg1, %c0_i32 : i32
    %1 = arith.extui %0 : i1 to i32
    %c0_i32_0 = arith.constant 0 : i32
    %2 = arith.cmpi ne, %1, %c0_i32_0 : i32
    scf.if %2 {
      %cst_8 = arith.constant 0.000000e+00 : f32
      %12 = vector.broadcast %cst_8 : f32 to vector<8x1xf32>
      %c0_9 = arith.constant 0 : index
      %c0_10 = arith.constant 0 : index
      %13 = vector.load %arg4[%c0_9, %c0_10] : memref<8x1xf32, #tpu.memory_space<vmem>>, vector<8x1xf32>
      tpu.vector_store %arg4[%c0_9, %c0_10], %12 {strides = array<i32>} : memref<8x1xf32, #tpu.memory_space<vmem>>, vector<8x1xf32>,
    } else {
    }
    %c0 = arith.constant 0 : index
    %c0_1 = arith.constant 0 : index
    %3 = vector.load %arg2[%c0, %c0_1] : memref<8x256xf32, #tpu.memory_space<vmem>>, vector<8x256xf32>
    %c0_2 = arith.constant 0 : index
    %c0_3 = arith.constant 0 : index
    %4 = vector.load %arg4[%c0_2, %c0_3] : memref<8x1xf32, #tpu.memory_space<vmem>>, vector<8x1xf32>
    %cst = arith.constant dense<0.000000e+00> : vector<8xf32>
    %5 = vector.multi_reduction <add>, %3, %cst [1] : vector<8x256xf32> to vector<8xf32>
    %6 = vector.shape_cast %5 : vector<8xf32> to vector<8x1xf32>
    %7 = arith.addf %4, %6 : vector<8x1xf32>
    %c0_4 = arith.constant 0 : index
    %c0_5 = arith.constant 0 : index
    %8 = vector.load %arg4[%c0_4, %c0_5] : memref<8x1xf32, #tpu.memory_space<vmem>>, vector<8x1xf32>
    tpu.vector_store %arg4[%c0_4, %c0_5], %7 {strides = array<i32>} : memref<8x1xf32, #tpu.memory_space<vmem>>, vector<8x1xf32>,
    %c0_i32_6 = arith.constant 0 : i32
    %9 = arith.cmpi eq, %arg1, %c0_i32_6 : i32
    %10 = arith.extui %9 : i1 to i32
    %c0_i32_7 = arith.constant 0 : i32
    %11 = arith.cmpi ne, %10, %c0_i32_7 : i32
    scf.if %11 {
      %c0_8 = arith.constant 0 : index
      %c0_9 = arith.constant 0 : index
      %12 = vector.load %arg4[%c0_8, %c0_9] : memref<8x1xf32, #tpu.memory_space<vmem>>, vector<8x1xf32>
      %cst_10 = arith.constant 3.906250e-03 : f32
      %13 = vector.broadcast %cst_10 : f32 to vector<8x1xf32>
      %14 = arith.mulf %12, %13 : vector<8x1xf32>
      %c0_11 = arith.constant 0 : index
      %c0_12 = arith.constant 0 : index
      %15 = vector.load %arg3[%c0_11, %c0_12] : memref<8x1xf32, #tpu.memory_space<vmem>>, vector<8x1xf32>
      tpu.vector_store %arg3[%c0_11, %c0_12], %14 {strides = array<i32>} : memref<8x1xf32, #tpu.memory_space<vmem>>, vector<8x1xf32>,
    } else {
    }
    return
  }
  func.func @transform_0(%arg0: i32, %arg1: i32) -> (i32, i32) {
    %c0_i32 = arith.constant 0 : i32
    return %arg0, %arg1 : i32, i32
  }
  func.func @transform_1(%arg0: i32, %arg1: i32) -> (i32, i32) {
    %c0_i32 = arith.constant 0 : i32
    %c0_i32_0 = arith.constant 0 : i32
    return %arg0, %c0_i32 : i32, i32
  }
}

</mosaic_0001>

<bundles_post_ra>
// kernel: tpu_custom_call.1
= control target key start
LH: loop header
LB: loop body
LE: loop exit
PB: predicated region body
PF: predicated region fallthrough
CT: control target
= control target key end

     0   :  { %6 = vsyncpa [#allocation4], 0  ;;  %s72_s6 = smov [#allocation3]   ;;  %s99_s0 = inlined_call_operand.hbm [shape: f32[8,256], index: 0, kind: input, shape index: {}]   ;;  %s100_s1 = inlined_call_operand.vmem [shape: f32[8,1], index: 1, kind: output, shape index: {}]  }
   0x1   :  { %s13_s7 = sshll.u32 %s72_s6, 4  ;;  %s48_s10 = scalar_lea.hbm %s99_s0, 256  ;;  %s14_s7 = int_to_ptr.vmem [resolvable:$true] %s13_s7 }
   0x2   :  { %p49_p0 = scmp.ne.s32.totalorder %s99_s0, %s48_s10  ;;  %p52_p1 = scmp.lt.u32.totalorder %s48_s10, %s99_s0 }
   0x4   :  { %p54_p2 = pnand %p52_p1, %p49_p0 }
   0x6   :  { %57 = shalt.err (!%p54_p2)
}
   0x7   :  { %s58_s15 = scalar_lea.vmem %s14_s7, 256  ;;  %p63_p4 = scmp.lt.s32.totalorder %s14_s7, %s14_s7 }
   0x8   :  { %p59_p3 = scmp.ne.s32.totalorder %s14_s7, %s58_s15  ;;  %p64_p5 = scmp.lt.s32.totalorder %s58_s15, %s58_s15 }
   0xa   :  { %p65_p6 = por %p64_p5, %p63_p4 }
   0xc   :  { %p66_p7 = pnand %p65_p6, %p59_p3 }
   0xe   :  { %69 = shalt.err (!%p66_p7)
}
   0xf   :  { %16 = dma.hbm_to_vmem [thread:$0]  %s99_s0, 256, %s14_s7, [#allocation4]  }
  0x10   :  { %70 = dma.done.wait [#allocation4], 256  }
  0x11   :  { %71 = vsyncadd [#allocation4], 4294967040  ;;  %vm24_vm0 = vcmask 7168   ;;  %v73_v0 = vmov 0.0   ;;  %v26_v1 = vld [vmem:[#allocation3] sm:$0xff]  ;;  %v27_v2 = vld [vmem:[#allocation3 + $0x8] sm:$0xff] }
  0x12   :  { %25 = vst.msk [vmem:[#allocation2] sm:$0xff] %vm24_vm0, %v73_v0  ;;  %v29_v3 = vadd.f32 %v27_v2, %v26_v1 }
  0x14   :  { %30 = vadd.xlane.f32.xlu0 %v29_v3 }
  0x19   :  { %v28_v4 = vld [vmem:[#allocation2] sm:$0xff] }
  0xa1   :  { %v31_v5 = vpop.xlane.xlu0 %30 }
  0xa2   :  { %v32_v6 = vadd.f32 %v31_v5, %v28_v4 }
  0xa4   :  { %34 = vst.msk [vmem:[#allocation2] sm:$0xff] %vm24_vm0, %v32_v6 }
  0xab   :  { %v38_v7 = vld [vmem:[#allocation2] sm:$0xff] }
  0xac   :  { %v39_v8 = vmul.f32 0.00390625, %v38_v7 }
  0xae   :  { %40 = vst.msk [vmem:[%s100_s1] sm:$0xff] %vm24_vm0, %v39_v8 }
  0xaf   :  { %45 = vsyncpa [#allocation4], 1 }

</bundles_post_ra>
